<compile_context>
chip_gen: v7x
topology: tpu7x:2x2x1
jax: 0.10.0
libtpu: 0.0.40
codegen_flags: <defaults>
</compile_context>

<pallas_src>
import jax
import jax.numpy as jnp
from jax.experimental import pallas as pl
from jax.experimental.pallas import tpu as pltpu


def _round_up(x, m):
    return ((x + m - 1) // m) * m


def _vmem_capacity_bytes(default=64 << 20):
    """Physical VMEM of the current chip (64 MiB v7x, 128 MiB v5e/v6e)."""
    try:
        cap = int(pltpu.get_tpu_info().vmem_capacity_bytes)
        if cap > 0:
            return cap
    except Exception:
        pass
    return default  # conservative (v7x-sized) fallback


def _choose_nb(n, per_image_bytes, target_bytes):
    """Largest divisor of n whose x block is <= target_bytes, while keeping
    enough grid steps for double-buffering on both v7x TensorCores
    (>=4 steps when N allows it, >=2 otherwise)."""
    nb_max = max(1, target_bytes // max(per_image_bytes, 1))
    if n >= 4:
        nb_max = min(nb_max, n // 4)
    elif n >= 2:
        nb_max = min(nb_max, n // 2)
    nb_max = int(max(1, min(nb_max, n)))
    for nb in range(nb_max, 0, -1):
        if n % nb == 0:
            return nb
    return 1


def _excite(x_avg, x_max, w1t, b1, w2t, b2):
    """Fused SE bottleneck on stacked [avg; max] pooled rows -> sigmoid gate.

    Weights stay in their native dtype (the MXU takes bf16/f32 directly with
    f32 accumulation); only the tiny pooled rows / biases are cast.
    x_avg, x_max: (nb, C) f32.  Returns (nb, C) f32 gate.
    """
    nb = x_avg.shape[0]
    pooled = jnp.concatenate([x_avg, x_max], axis=0).astype(w1t.dtype)   # (2nb, C)
    h = jnp.dot(pooled, w1t, preferred_element_type=jnp.float32)
    h = jnp.maximum(h + b1.astype(jnp.float32), 0.0).astype(w2t.dtype)   # (2nb, Cmid)
    y = jnp.dot(h, w2t, preferred_element_type=jnp.float32)
    y = y + b2.astype(jnp.float32)                                       # (2nb, C)
    return jax.nn.sigmoid(y[:nb] + y[nb:])                               # (nb, C)


# --------------------------------------------------------------------------
# Fused single-pass path
# --------------------------------------------------------------------------
def _make_fused_kernel(hw):
    inv_hw = 1.0 / hw

    def kernel(x_ref, w1t_ref, b1_ref, w2t_ref, b2_ref, o_ref):
        x = x_ref[...]                                             # (nb, C, hw)
        # squeeze: avg / max pool over the spatial lane axis
        x_avg = jnp.sum(x, axis=-1, dtype=jnp.float32) * inv_hw    # (nb, C)
        x_max = jnp.max(x, axis=-1).astype(jnp.float32)            # (nb, C)
        # excitation: one fused bottleneck over [avg; max]
        gate = _excite(x_avg, x_max,
                       w1t_ref[...], b1_ref[...], w2t_ref[...], b2_ref[...])
        gate = gate.astype(x.dtype)[:, :, None]                    # (nb, C, 1)
        # scale in native dtype
        o_ref[...] = (x * gate).astype(o_ref.dtype)

    return kernel


def _channel_se_fused(x_flat, w1t, b1r, w2t, b2r, *, hw, nb, w_bytes, vmem_cap,
                      donate_input):
    n, c, _ = x_flat.shape
    c_mid = w1t.shape[1]
    itemsize = jnp.dtype(x_flat.dtype).itemsize
    block_bytes = nb * c * hw * itemsize

    # 2 in + 2 out x blocks (double-buffered) + double-buffered weights + slack.
    vmem_limit = int(min(vmem_cap - (2 << 20),
                         max(4 * block_bytes + 2 * w_bytes + (2 << 20), 16 << 20)))

    cost = pl.CostEstimate(
        flops=3 * n * c * hw + 8 * n * c * c_mid,
        transcendentals=2 * n * c,
        bytes_accessed=2 * n * c * hw * itemsize + w_bytes,
    )

    return pl.pallas_call(
        _make_fused_kernel(hw),
        out_shape=jax.ShapeDtypeStruct((n, c, hw), x_flat.dtype),
        grid_spec=pltpu.PrefetchScalarGridSpec(
            num_scalar_prefetch=0,
            grid=(n // nb,),
            in_specs=[
                pl.BlockSpec((nb, c, hw), lambda i: (i, 0, 0)),
                pl.BlockSpec((c, c_mid), lambda i: (0, 0)),
                pl.BlockSpec((1, c_mid), lambda i: (0, 0)),
                pl.BlockSpec((c_mid, c), lambda i: (0, 0)),
                pl.BlockSpec((1, c), lambda i: (0, 0)),
            ],
            out_specs=pl.BlockSpec((nb, c, hw), lambda i: (i, 0, 0)),
        ),
        compiler_params=pltpu.CompilerParams(
            dimension_semantics=("parallel",),
            vmem_limit_bytes=vmem_limit,
        ),
        cost_estimate=cost,
        # Channel-scale is in-place safe; callers that do not reuse x can
        # donate the input buffer to save an N*C*HW HBM allocation.
        input_output_aliases=({0: 0} if donate_input else {}),
    )(x_flat, w1t, b1r, w2t, b2r)


# --------------------------------------------------------------------------
# Two-pass spatial-tiled fallback (large per-image C*HW, e.g. v7x 64 MiB VMEM)
# --------------------------------------------------------------------------
def _make_pool_gate_kernel(hw, thw, n_s):
    rem = hw % thw
    inv_hw = 1.0 / hw

    def kernel(x_ref, w1t_ref, b1_ref, w2t_ref, b2_ref, g_ref, sum_sc, max_sc):
        s = pl.program_id(1)

        @pl.when(s == 0)
        def _():
            sum_sc[...] = jnp.zeros_like(sum_sc)
            max_sc[...] = jnp.full_like(max_sc, -jnp.inf)

        xf = x_ref[...].astype(jnp.float32)                        # (1, C, thw)
        if rem != 0:
            # Cheap (1,1,thw) lane-index row broadcast into the selects
            # (no full-block iota), masking the out-of-range tail lanes.
            lane = jax.lax.broadcasted_iota(jnp.int32, (1, 1, thw), 2)
            valid = (s * thw + lane) < hw
            xs = jnp.where(valid, xf, 0.0)
            xm = jnp.where(valid, xf, -jnp.inf)
        else:
            xs = xf
            xm = xf
        sum_sc[...] = sum_sc[...] + jnp.sum(xs, axis=-1)           # (1, C)
        max_sc[...] = jnp.maximum(max_sc[...], jnp.max(xm, axis=-1))

        @pl.when(s == n_s - 1)
        def _():
            gate = _excite(sum_sc[...] * inv_hw, max_sc[...],
                           w1t_ref[...], b1_ref[...], w2t_ref[...], b2_ref[...])
            g_ref[...] = gate.astype(g_ref.dtype)[:, :, None]      # (1, C, 1)

    return kernel


def _scale_kernel(x_ref, g_ref, o_ref):
    o_ref[...] = (x_ref[...] * g_ref[...]).astype(o_ref.dtype)


def _channel_se_two_pass(x_flat, w1t, b1r, w2t, b2r, *, hw, thw, w_bytes, vmem_cap):
    n, c, _ = x_flat.shape
    c_mid = w1t.shape[1]
    itemsize = jnp.dtype(x_flat.dtype).itemsize
    n_s = pl.cdiv(hw, thw)
    block_bytes = c * thw * itemsize

    vmem_a = int(min(vmem_cap - (2 << 20),
                     max(2 * block_bytes + 2 * w_bytes + (2 << 20), 16 << 20)))
    vmem_b = int(min(vmem_cap - (2 << 20),
                     max(4 * block_bytes + (2 << 20), 16 << 20)))

    # Pass A: spatially tiled pooling + gate computation (gate is (N, C, 1)).
    gate = pl.pallas_call(
        _make_pool_gate_kernel(hw, thw, n_s),
        out_shape=jax.ShapeDtypeStruct((n, c, 1), x_flat.dtype),
        grid_spec=pltpu.PrefetchScalarGridSpec(
            num_scalar_prefetch=0,
            grid=(n, n_s),
            in_specs=[
                pl.BlockSpec((1, c, thw), lambda b, s: (b, 0, s)),
                pl.BlockSpec((c, c_mid), lambda b, s: (0, 0)),
                pl.BlockSpec((1, c_mid), lambda b, s: (0, 0)),
                pl.BlockSpec((c_mid, c), lambda b, s: (0, 0)),
                pl.BlockSpec((1, c), lambda b, s: (0, 0)),
            ],
            out_specs=pl.BlockSpec((1, c, 1), lambda b, s: (b, 0, 0)),
            scratch_shapes=[pltpu.VMEM((1, c), jnp.float32),
                            pltpu.VMEM((1, c), jnp.float32)],
        ),
        compiler_params=pltpu.CompilerParams(
            dimension_semantics=("parallel", "arbitrary"),
            vmem_limit_bytes=vmem_a,
        ),
    )(x_flat, w1t, b1r, w2t, b2r)

    # Pass B: spatially tiled channel-wise scale.
    return pl.pallas_call(
        _scale_kernel,
        out_shape=jax.ShapeDtypeStruct((n, c, hw), x_flat.dtype),
        grid_spec=pltpu.PrefetchScalarGridSpec(
            num_scalar_prefetch=0,
            grid=(n, n_s),
            in_specs=[
                pl.BlockSpec((1, c, thw), lambda b, s: (b, 0, s)),
                pl.BlockSpec((1, c, 1), lambda b, s: (b, 0, 0)),
            ],
            out_specs=pl.BlockSpec((1, c, thw), lambda b, s: (b, 0, s)),
        ),
        compiler_params=pltpu.CompilerParams(
            dimension_semantics=("parallel", "parallel"),
            vmem_limit_bytes=vmem_b,
        ),
    )(x_flat, gate)


# --------------------------------------------------------------------------
# Public wrapper
# --------------------------------------------------------------------------
def channel_se(x, w1, b1, w2, b2, *, target_block_bytes=None, donate_input=False,
               force_two_pass=False, spatial_block=None):
    """Pallas TPU ChannelSe forward.

    x : (N, C, H, W)
    w1: (C//widen, C), b1: (C//widen,)   -- first 1x1 conv (flattened)
    w2: (C, C//widen), b2: (C,)          -- second 1x1 conv (flattened)

    target_block_bytes: override the auto (VMEM-derived) x-block size.
    force_two_pass / spatial_block: testing/override knobs for the
    spatial-tiled fallback path.
    """
    n, c, h, w = x.shape
    hw = h * w
    c_mid = w1.shape[0]
    itemsize = jnp.dtype(x.dtype).itemsize

    x_flat = x.reshape(n, c, hw)            # free: contiguous NCHW reshape
    w1t = jnp.transpose(w1)                 # (C, Cmid)
    w2t = jnp.transpose(w2)                 # (Cmid, C)
    b1r = b1.reshape(1, c_mid)
    b2r = b2.reshape(1, c)

    w_bytes = int((w1t.size + w2t.size) * jnp.dtype(w1.dtype).itemsize
                  + (b1r.size + b2r.size) * jnp.dtype(b1.dtype).itemsize)

    # Generation-aware sizing: 64 MiB VMEM (v7x) vs 128 MiB (v5e/v6e).
    vmem_cap = _vmem_capacity_bytes()
    headroom = 4 << 20
    # BlockSpec double-buffers the constant-index weights too -> 2*w_bytes.
    budget = max(vmem_cap - 2 * w_bytes - headroom, 4 << 20)
    if target_block_bytes is None:
        cap = (12 << 20) if vmem_cap <= (64 << 20) else (24 << 20)
        target_block_bytes = int(max(min(budget // 4, cap), 1 << 20))

    per_image = c * hw * itemsize
    max_fused_block = budget // 4           # in + out blocks, double-buffered

    if force_two_pass or per_image > max_fused_block:
        # Spatial-tiled fallback so big feature maps never blow v7x's VMEM.
        if spatial_block is not None:
            thw = max(128, (int(spatial_block) // 128) * 128)
        else:
            thw = max(128, (target_block_bytes // max(c * itemsize, 1)) // 128 * 128)
        thw = min(thw, _round_up(hw, 128))
        out_flat = _channel_se_two_pass(x_flat, w1t, b1r, w2t, b2r, hw=hw, thw=thw,
                                        w_bytes=w_bytes, vmem_cap=vmem_cap)
    else:
        nb = _choose_nb(n, per_image, min(target_block_bytes, max_fused_block))
        out_flat = _channel_se_fused(x_flat, w1t, b1r, w2t, b2r, hw=hw, nb=nb,
                                     w_bytes=w_bytes, vmem_cap=vmem_cap,
                                     donate_input=donate_input)

    return out_flat.reshape(n, c, h, w)


def channel_se_ref(x, w1, b1, w2, b2):
    """Pure-JAX reference matching the PyTorch forward."""
    x_avg = jnp.mean(x, axis=(2, 3))                       # (N, C)
    x_max = jnp.max(x, axis=(2, 3))                        # (N, C)

    def fc_n(v):  # v: (N, C)
        h1 = jnp.maximum(v @ w1.T + b1, 0.0)               # (N, Cmid)
        return h1 @ w2.T + b2                              # (N, C)

    x_sta = fc_n(x_avg) + fc_n(x_max)                      # (N, C)
    gate = jax.nn.sigmoid(x_sta)[:, :, None, None]         # (N, C, 1, 1)
    return x * gate


def _make_case(key, n, c, h, w, widen):
    c_mid = c // widen
    kx, k1, k2, k3, k4 = jax.random.split(key, 5)
    x = jax.random.normal(kx, (n, c, h, w), dtype=jnp.float32)
    w1 = jax.random.normal(k1, (c_mid, c), dtype=jnp.float32) / jnp.sqrt(c)
    b1 = jax.random.normal(k2, (c_mid,), dtype=jnp.float32) * 0.01
    w2 = jax.random.normal(k3, (c, c_mid), dtype=jnp.float32) / jnp.sqrt(c_mid)
    b2 = jax.random.normal(k4, (c,), dtype=jnp.float32) * 0.01
    return x, w1, b1, w2, b2


if __name__ == "__main__":
    key = jax.random.PRNGKey(0)
    k1, k2, k3, k4 = jax.random.split(key, 4)

    # Case 1: fused path, lane-aligned spatial (16x16 -> HW=256), C=64, widen=16.
    x, w1, b1, w2, b2 = _make_case(k1, 2, 64, 16, 16, 16)
    out = jax.block_until_ready(channel_se(x, w1, b1, w2, b2))
    ref = channel_se_ref(x, w1, b1, w2, b2)
    assert out.shape == x.shape and out.dtype == x.dtype
    assert jnp.allclose(out, ref, atol=1e-5, rtol=1e-5), "case 1 mismatch"

    # Case 2: fused path, NON-lane-aligned spatial (7x7 -> HW=49, no padding).
    x, w1, b1, w2, b2 = _make_case(k2, 4, 32, 7, 7, 8)
    out = jax.block_until_ready(channel_se(x, w1, b1, w2, b2))
    ref = channel_se_ref(x, w1, b1, w2, b2)
    assert out.shape == x.shape and out.dtype == x.dtype
    assert jnp.allclose(out, ref, atol=1e-5, rtol=1e-5), "case 2 mismatch"

    # Case 3: forced two-pass spatial-tiled path, HW divisible by the tile
    # (32x32 -> HW=1024, tile 256 -> 4 spatial steps).
    x, w1, b1, w2, b2 = _make_case(k3, 2, 16, 32, 32, 4)
    out = jax.block_until_ready(
        channel_se(x, w1, b1, w2, b2, force_two_pass=True, spatial_block=256))
    ref = channel_se_ref(x, w1, b1, w2, b2)
    assert out.shape == x.shape and out.dtype == x.dtype
    assert jnp.allclose(out, ref, atol=1e-5, rtol=1e-5), "case 3 mismatch"

    # Case 4: forced two-pass path with a ragged last spatial tile
    # (20x25 -> HW=500, tile 256 -> masked tail lanes).
    x, w1, b1, w2, b2 = _make_case(k4, 2, 8, 20, 25, 4)
    out = jax.block_until_ready(
        channel_se(x, w1, b1, w2, b2, force_two_pass=True, spatial_block=256))
    ref = channel_se_ref(x, w1, b1, w2, b2)
    assert out.shape == x.shape and out.dtype == x.dtype
    assert jnp.allclose(out, ref, atol=1e-5, rtol=1e-5), "case 4 mismatch"

    print("KERNEL_OK")
</pallas_src>

<mosaic_0001>
module attributes {stable_mosaic.version = 11 : i64} {
  func.func @kernel(%arg0: i32, %arg1: memref<1x64x256xf32, #tpu.memory_space<vmem>>, %arg2: memref<64x4xf32, #tpu.memory_space<vmem>>, %arg3: memref<1x4xf32, #tpu.memory_space<vmem>>, %arg4: memref<4x64xf32, #tpu.memory_space<vmem>>, %arg5: memref<1x64xf32, #tpu.memory_space<vmem>>, %arg6: memref<1x64x256xf32, #tpu.memory_space<vmem>>) attributes {dimension_semantics = [#tpu.dimension_semantics<parallel>], iteration_bounds = array<i64: 2>, scalar_prefetch = 0 : i64, scratch_operands = 0 : i64, tpu.core_type = #tpu.core_type<tc>, window_params = [{transform_indices = @transform_0, window_bounds = array<i64: 1, 64, 256>}, {pipeline_mode = #tpu.pipeline_mode<synchronous>, transform_indices = @transform_1, window_bounds = array<i64: 64, 4>}, {pipeline_mode = #tpu.pipeline_mode<synchronous>, transform_indices = @transform_2, window_bounds = array<i64: 1, 4>}, {pipeline_mode = #tpu.pipeline_mode<synchronous>, transform_indices = @transform_3, window_bounds = array<i64: 4, 64>}, {pipeline_mode = #tpu.pipeline_mode<synchronous>, transform_indices = @transform_4, window_bounds = array<i64: 1, 64>}, {transform_indices = @transform_5, window_bounds = array<i64: 1, 64, 256>}]} {
    %c0 = arith.constant 0 : index
    %c0_0 = arith.constant 0 : index
    %c0_1 = arith.constant 0 : index
    %0 = vector.load %arg1[%c0, %c0_0, %c0_1] : memref<1x64x256xf32, #tpu.memory_space<vmem>>, vector<1x64x256xf32>
    %cst = arith.constant dense<0.000000e+00> : vector<1x64xf32>
    %1 = vector.multi_reduction <add>, %0, %cst [2] : vector<1x64x256xf32> to vector<1x64xf32>
    %cst_2 = arith.constant 3.906250e-03 : f32
    %2 = vector.broadcast %cst_2 : f32 to vector<1x64xf32>
    %3 = arith.mulf %1, %2 : vector<1x64xf32>
    %cst_3 = arith.constant dense<0xFF800000> : vector<1x64xf32>
    %4 = vector.multi_reduction <maximumf>, %0, %cst_3 [2] : vector<1x64x256xf32> to vector<1x64xf32>
    %c0_4 = arith.constant 0 : index
    %c0_5 = arith.constant 0 : index
    %5 = vector.load %arg2[%c0_4, %c0_5] : memref<64x4xf32, #tpu.memory_space<vmem>>, vector<64x4xf32>
    %c0_6 = arith.constant 0 : index
    %c0_7 = arith.constant 0 : index
    %6 = vector.load %arg3[%c0_6, %c0_7] : memref<1x4xf32, #tpu.memory_space<vmem>>, vector<1x4xf32>
    %c0_8 = arith.constant 0 : index
    %c0_9 = arith.constant 0 : index
    %7 = vector.load %arg4[%c0_8, %c0_9] : memref<4x64xf32, #tpu.memory_space<vmem>>, vector<4x64xf32>
    %c0_10 = arith.constant 0 : index
    %c0_11 = arith.constant 0 : index
    %8 = vector.load %arg5[%c0_10, %c0_11] : memref<1x64xf32, #tpu.memory_space<vmem>>, vector<1x64xf32>
    %9 = tpu.concatenate %3, %4 in 0 : vector<1x64xf32>, vector<1x64xf32> -> vector<2x64xf32>
    %cst_12 = arith.constant dense<0.000000e+00> : vector<2x4xf32>
    %10 = tpu.matmul %9, %5, %cst_12 {dimension_numbers = #tpu.dot_dimension_numbers<[1], [0], [0], [1], [0, 0, 1, 1], [], []>} : vector<2x64xf32>, vector<64x4xf32>, vector<2x4xf32> -> vector<2x4xf32>
    %11 = vector.broadcast %6 : vector<1x4xf32> to vector<2x4xf32>
    %12 = arith.addf %10, %11 : vector<2x4xf32>
    %cst_13 = arith.constant 0.000000e+00 : f32
    %13 = vector.broadcast %cst_13 : f32 to vector<2x4xf32>
    %14 = arith.maximumf %12, %13 : vector<2x4xf32>
    %cst_14 = arith.constant dense<0.000000e+00> : vector<2x64xf32>
    %15 = tpu.matmul %14, %7, %cst_14 {dimension_numbers = #tpu.dot_dimension_numbers<[1], [0], [0], [1], [0, 0, 1, 1], [], []>} : vector<2x4xf32>, vector<4x64xf32>, vector<2x64xf32> -> vector<2x64xf32>
    %16 = vector.broadcast %8 : vector<1x64xf32> to vector<2x64xf32>
    %17 = arith.addf %15, %16 : vector<2x64xf32>
    %18 = vector.extract_strided_slice %17 {offsets = [0, 0], sizes = [1, 64], strides = [1, 1]} : vector<2x64xf32> to vector<1x64xf32>
    %19 = vector.extract_strided_slice %17 {offsets = [1, 0], sizes = [1, 64], strides = [1, 1]} : vector<2x64xf32> to vector<1x64xf32>
    %20 = arith.addf %18, %19 : vector<1x64xf32>
    %21 = arith.negf %20 : vector<1x64xf32>
    %22 = math.exp %21 : vector<1x64xf32>
    %cst_15 = arith.constant 1.000000e+00 : f32
    %23 = vector.broadcast %cst_15 : f32 to vector<1x64xf32>
    %24 = arith.addf %23, %22 : vector<1x64xf32>
    %25 = arith.divf %23, %24 : vector<1x64xf32>
    %26 = vector.shape_cast %25 : vector<1x64xf32> to vector<1x64x1xf32>
    %27 = vector.broadcast %26 : vector<1x64x1xf32> to vector<1x64x256xf32>
    %28 = arith.mulf %0, %27 : vector<1x64x256xf32>
    %c0_16 = arith.constant 0 : index
    %c0_17 = arith.constant 0 : index
    %c0_18 = arith.constant 0 : index
    %29 = vector.load %arg6[%c0_16, %c0_17, %c0_18] : memref<1x64x256xf32, #tpu.memory_space<vmem>>, vector<1x64x256xf32>
    tpu.vector_store %arg6[%c0_16, %c0_17, %c0_18], %28 {strides = array<i32>} : memref<1x64x256xf32, #tpu.memory_space<vmem>>, vector<1x64x256xf32>,
    return
  }
  func.func @transform_0(%arg0: i32) -> (i32, i32, i32) {
    %c0_i32 = arith.constant 0 : i32
    %c0_i32_0 = arith.constant 0 : i32
    %c0_i32_1 = arith.constant 0 : i32
    return %arg0, %c0_i32, %c0_i32_0 : i32, i32, i32
  }
  func.func @transform_1(%arg0: i32) -> (i32, i32) {
    %c0_i32 = arith.constant 0 : i32
    %c0_i32_0 = arith.constant 0 : i32
    %c0_i32_1 = arith.constant 0 : i32
    return %c0_i32, %c0_i32_0 : i32, i32
  }
  func.func @transform_2(%arg0: i32) -> (i32, i32) {
    %c0_i32 = arith.constant 0 : i32
    %c0_i32_0 = arith.constant 0 : i32
    %c0_i32_1 = arith.constant 0 : i32
    return %c0_i32, %c0_i32_0 : i32, i32
  }
  func.func @transform_3(%arg0: i32) -> (i32, i32) {
    %c0_i32 = arith.constant 0 : i32
    %c0_i32_0 = arith.constant 0 : i32
    %c0_i32_1 = arith.constant 0 : i32
    return %c0_i32, %c0_i32_0 : i32, i32
  }
  func.func @transform_4(%arg0: i32) -> (i32, i32) {
    %c0_i32 = arith.constant 0 : i32
    %c0_i32_0 = arith.constant 0 : i32
    %c0_i32_1 = arith.constant 0 : i32
    return %c0_i32, %c0_i32_0 : i32, i32
  }
  func.func @transform_5(%arg0: i32) -> (i32, i32, i32) {
    %c0_i32 = arith.constant 0 : i32
    %c0_i32_0 = arith.constant 0 : i32
    %c0_i32_1 = arith.constant 0 : i32
    return %arg0, %c0_i32, %c0_i32_0 : i32, i32, i32
  }
}

</mosaic_0001>

<bundles_post_ra>
// kernel: tpu_custom_call.1
= control target key start
LH: loop header
LB: loop body
LE: loop exit
PB: predicated region body
PF: predicated region fallthrough
CT: control target
= control target key end

     0   :  { %10 = vsyncpa [#allocation3], 0  ;;  %s1367_s0 = inlined_call_operand.hbm [shape: f32[2,64,256], index: 0, kind: input, shape index: {}]   ;;  %s1368_s1 = inlined_call_operand.vmem [shape: f32[64,4], index: 1, kind: input, shape index: {}]   ;;  %s1369_s2 = inlined_call_operand.vmem [shape: f32[1,4], index: 2, kind: input, shape index: {}]   ;;  %s1370_s3 = inlined_call_operand.vmem [shape: f32[4,64], index: 3, kind: input, shape index: {}]   ;;  %s1371_s4 = inlined_call_operand.vmem [shape: f32[1,64], index: 4, kind: input, shape index: {}]   ;;  %s1372_s5 = inlined_call_operand.hbm [shape: f32[2,64,256], index: 5, kind: output, shape index: {}]  }
   0x1   :  { %12 = vsyncpa [#allocation3 + $0x1], 0 }
   0x2   :  { %13 = vsyncpa [#allocation4], 0 }
   0x3   :  { %15 = vsyncpa [#allocation4 + $0x1], 0  ;;  %s1032_s18 = smov 0   ;;  %s1034_s19 = smov 0  }
   0x4   :  { %s1036_s20 = smov 0   ;;  %s1038_s21 = smov 0  }
   0x5 LB: > { %s1053_s22 = sadd.s32 4294967295, %s991_s21   ;;  %s769_s23 = sadd.s32 4294967294, %s991_s21   ;;  %s991_s21 = sphi %s1038_s21, %s1385_s21   ;;  %s987_s20 = sphi %s1036_s20, %s1384_s20   ;;  %s983_s19 = sphi %s1034_s19, %s1383_s19   ;;  %s979_s18 = sphi %s1032_s18, %s1382_s18  }
   0x6   : > { %s1057_s24 = sadd.s32 1, %s991_s21   ;;  %s28_s25 = sadd.s32 1, %s987_s20 }
   0x7   : > { %s25_s26 = ssub.s32 %s991_s21, %s1057_s24  ;;  %p35_p0 = scmp.ne.s32.totalorder %s987_s20, %s983_s19 }
   0x8   : > { %p26_p1 = scmp.eq.s32.totalorder %s25_s26, 0  ;;  %p36_p2 = scmp.eq.s32.totalorder %s991_s21, 0 }
   0x9   : > { %p41_p3 = scmp.ne.s32.totalorder %s983_s19, %s979_s18  ;;  %p42_p4 = scmp.eq.s32.totalorder %s1053_s22, 0 }
   0xa   : > { %s1069_s27 = scalar_select %p26_p1, %s987_s20, %s28_s25  }
   0xb   : > { %p1071_p5 = por %p36_p2, %p35_p0  ;;  %p1075_p6 = por %p42_p4, %p41_p3 }
   0xc   : > { %p149_p7 = scmp.eq.s32.totalorder %s1053_s22, 1  ;;  %p155_p8 = scmp.eq.s32.totalorder %s769_s23, 1 }
   0xd   : > { %p850_p10 = scmp.lt.s32.totalorder %s991_s21, 2  ;;  %s187_s7 = sand.u32 1, %s987_s20  }
   0xe   : > { %p1082_p11 = por %p149_p7, %p35_p0  ;;  %p1086_p12 = por %p155_p8, %p41_p3 }
   0xf   : > { %s789_s8 = sshll.u32 %s991_s21, 11  ;;  %s772_s9 = sshll.u32 %s187_s7, 7 }
  0x10   : > { %s1376_s30 = scalar_select %p1082_p11, 1, 0 }
  0x11   : > { %s1377_s6 = scalar_select %p1086_p12, 1, 0 }
  0x12   : > { %s1095_s12 = scalar_lea.hbm %s1367_s0, %s789_s8  ;;  %s191_s13 = scalar_lea.vmem [#allocation2], %s772_s9 }
  0x13   : > { %s198_s14 = sshll.u32 %s191_s13, 4  ;;  %p1099_p13 = pnand %p850_p10, %p1071_p5  ;;  %s1103_s14 = int_to_ptr.vmem [resolvable:$true] %s198_s14 }
  0x14   : > { %s1105_s16 = scalar_lea.sflag [#allocation3], %s187_s7  ;;  %s895_s17 = scalar_lea.hbm %s1095_s12, 2048 }
  0x15   : > { %p896_p0 = scmp.ne.s32.totalorder %s1095_s12, %s895_s17  ;;  %p897_p1 = pneg %p1099_p13 }
  0x16   : > { %s900_s26 = scalar_lea.hbm %s1367_s0, 4096  ;;  %p901_p4 = scmp.lt.u32.totalorder %s1095_s12, %s1367_s0 }
  0x17   : > { %p898_p2 = pnand %p897_p1, %p896_p0  ;;  %p902_p5 = scmp.lt.u32.totalorder %s900_s26, %s895_s17 }
  0x18   : > { %p904_p8 = scmp.lt.u32.totalorder %s895_s17, %s1095_s12 }
  0x19   : > { %p899_p3 = pneg %p898_p2  ;;  %p903_p7 = por %p902_p5, %p901_p4 }
  0x1b   : > { %p905_p10 = por %p904_p8, %p903_p7 }
  0x1d   : > { %p906_p9 = pnand %p905_p10, %p899_p3 }
  0x1f   : > { %909 = shalt.err (!%p906_p9)
}
  0x20   : > { %s910_s7 = scalar_lea.vmem %s1103_s14, 2048  ;;  %s993_s9 = smov [#allocation2]  }
  0x21   : > { %p911_p0 = scmp.ne.s32.totalorder %s1103_s14, %s910_s7  ;;  %s915_s10 = sshll.u32 %s993_s9, 4  ;;  %s916_s10 = int_to_ptr.vmem [resolvable:$false] %s915_s10 }
  0x22   : > { %s917_s11 = scalar_lea.vmem %s916_s10, 4096  ;;  %p918_p11 = scmp.lt.s32.totalorder %s1103_s14, %s916_s10 }
  0x23   : > { %p913_p2 = pnand %p911_p0, %p897_p1  ;;  %p919_p4 = scmp.lt.s32.totalorder %s917_s11, %s910_s7 }
  0x25   : > { %p914_p12 = pneg %p913_p2  ;;  %p920_p5 = por %p919_p4, %p918_p11 }
  0x27   : > { %p921_p7 = pnand %p920_p5, %p914_p12 }
  0x29   : > { %924 = shalt.err (!%p921_p7)
}
  0x2a   : > { %s994_s13 = smov 256   ;;  %s995_s17 = smov 16  }
  0x2b   : > { %845 = dma.hbm_to_vmem [thread:$0]  (!%p1099_p13), %s1095_s12, 2048, %s1103_s14, %s1105_s16, %s994_s13, %s994_s13, %s995_s17  }
  0x2c   : > { %p775_p9 = scmp.ge.s32.totalorder %s991_s21, 1  ;;  %p206_p1 = scmp.lt.s32.totalorder %s991_s21, 3 }
  0x2e   : > { %p207_p3 = pnand %p775_p9, %p206_p1 }
  0x2f   : > { %s1136_s23 = sand.u32 (!%p207_p3), 1, %s983_s19  }
  0x30   : > { %210 = sbr.rel (%p207_p3) target bundleno = 845 (0x34d), region = 40  ;;  %s776_s25 = sshll.u32 (!%p207_p3), %s1136_s23, 7 }
  0x31   : > { %s213_s26 = scalar_lea.sflag (!%p207_p3), [#allocation3], %s1136_s23  ;;  %s1142_s28 = scalar_lea.vmem (!%p207_p3), [#allocation2], %s776_s25 }
  0x37   : > { %970 = dma.done.wait (%p1075_p6), %s213_s26, 2048  }
  0x38   : > { %972 = vsyncadd (%p1075_p6), %s213_s26, 4294965248  ;;  %v1149_v0 = vld [vmem:[%s1142_s28 + $0x20] sm:$0xff]  ;;  %v1152_v1 = vld [vmem:[%s1142_s28 + $0x28] sm:$0xff]  ;;  %v996_v35 = vmov 0.0|0.0   ;;  %vm997_vm0 = vmmov 0   ;;  %v998_v45 = vmov 0.0   ;;  %v334_v49 = vlaneseq }
  0x39   : > { %v1155_v2 = vld [vmem:[%s1142_s28] sm:$0xff]  ;;  %v265_v3 = vadd.f32 %v1152_v1, %v1149_v0  ;;  %v1160_v4 = vld [vmem:[%s1142_s28 + $0x8] sm:$0xff]  ;;  %v1163_v5 = vld [vmem:[%s1142_s28 + $0x30] sm:$0xff]  ;;  %v297_v16 = vmax.f32 %v1149_v0, %v1152_v1  ;;  %826 = vmatprep.subr.bf16.mxu0 %v996_v35  ;;  %818 = vmatprep.mubr.msk.f32.mxu0 %vm997_vm0, %v998_v45  ;;  %vm345_vm1 = vcmask 130112   ;;  %vm352_vm2 = vcmask 195712   ;;  %s1286_s10 = scalar_lea.vmem [#allocation5], %s776_s25 }
  0x3a   : > { %v1166_v6 = vld [vmem:[%s1142_s28 + $0x38] sm:$0xff]  ;;  %v259_v7 = vadd.f32 %v1160_v4, %v1155_v2  ;;  %v1171_v8 = vld [vmem:[%s1142_s28 + $0x10] sm:$0xff]  ;;  %v291_v13 = vmax.f32 %v1155_v2, %v1160_v4  ;;  %v1185_v14 = vld [vmem:[%s1142_s28 + $0x40] sm:$0xff]  ;;  %821 = vmatprep.subr.mxu1 %v998_v45  ;;  %823 = vmatprep.mubr.msk.f32.mxu1 %vm997_vm0, %v998_v45  ;;  %v335_v52 = vand.u32 127, %v334_v49  ;;  %v1252_v56 = vshrl.u32 %v334_v49, 7  ;;  %s790_s25 = sshll.u32 %s1053_s22, 11 }
  0x3b   : > { %v1174_v9 = vld [vmem:[%s1142_s28 + $0x18] sm:$0xff]  ;;  %266 = vadd.xlane.f32.xlu1 %v265_v3  ;;  %v268_v10 = vadd.f32 %v1166_v6, %v1163_v5  ;;  %v1188_v15 = vld [vmem:[%s1142_s28 + $0x48] sm:$0xff]  ;;  %v1195_v18 = vld [vmem:[%s1142_s28 + $0x50] sm:$0xff]  ;;  %v300_v20 = vmax.f32 %v1163_v5, %v1166_v6  ;;  %vm359_vm3 = vcmask 261312   ;;  %vm366_vm4 = vcmask 326912   ;;  %s696_s11 = sshll.u32 %s1286_s10, 4  ;;  %s1317_s26 = scalar_lea.hbm %s1372_s5, %s790_s25  ;;  %s1319_s11 = int_to_ptr.vmem [resolvable:$true] %s696_s11 }
  0x3c   : > { %260 = vadd.xlane.f32.xlu0 %v259_v7  ;;  %v262_v11 = vadd.f32 %v1174_v9, %v1171_v8  ;;  %v294_v12 = vmax.f32 %v1171_v8, %v1174_v9  ;;  %v271_v17 = vadd.f32 %v1188_v15, %v1185_v14  ;;  %v1198_v19 = vld [vmem:[%s1142_s28 + $0x58] sm:$0xff]  ;;  %v1205_v22 = vld [vmem:[%s1142_s28 + $0x60] sm:$0xff]  ;;  %v1208_v23 = vld [vmem:[%s1142_s28 + $0x68] sm:$0xff]  ;;  %v303_v24 = vmax.f32 %v1185_v14, %v1188_v15  ;;  %s683_s22 = scalar_lea.sflag [#allocation4], %s1136_s23  ;;  %p1379_p11 = scmp.ne.s32.totalorder %s1376_s30, 0 }
  0x3d   : > { %v274_v21 = vadd.f32 %v1198_v19, %v1195_v18  ;;  %v277_v25 = vadd.f32 %v1208_v23, %v1205_v22  ;;  %v1215_v26 = vld [vmem:[%s1142_s28 + $0x70] sm:$0xff]  ;;  %v1218_v27 = vld [vmem:[%s1142_s28 + $0x78] sm:$0xff]  ;;  %v306_v28 = vmax.f32 %v1195_v18, %v1198_v19  ;;  %v309_v31 = vmax.f32 %v1205_v22, %v1208_v23  ;;  %v315_v32 = vld [vmem:[%s1368_s1] sm:$0xff]  ;;  %s925_s28 = scalar_lea.vmem %s1319_s11, 2048  ;;  %s999_s29 = smov [#allocation5]  }
  0x3e   : > { %v280_v29 = vadd.f32 %v1218_v27, %v1215_v26  ;;  %v312_v30 = vmax.f32 %v1215_v26, %v1218_v27  ;;  %v316_v33 = vld [vmem:[%s1368_s1 + $0x8] sm:$0xff]  ;;  %v317_v36 = vld [vmem:[%s1368_s1 + $0x10] sm:$0xff]  ;;  %v318_v37 = vld [vmem:[%s1368_s1 + $0x18] sm:$0xff]  ;;  %v340_v54 = vadd.s32 4294967288, %v335_v52  ;;  %v347_v60 = vadd.s32 4294967280, %v335_v52  ;;  %p926_p6 = scmp.ne.s32.totalorder %s1319_s11, %s925_s28  ;;  %s929_s12 = sshll.u32 %s999_s29, 4  ;;  %s930_s12 = int_to_ptr.vmem [resolvable:$false] %s929_s12 }
  0x3f   : > { %269 = vadd.xlane.f32.xlu1 %v268_v10  ;;  %v827_v34 = vpack.c.bf16 %v316_v33, %v315_v32  ;;  %v830_v38 = vpack.c.bf16 %v318_v37, %v317_v36  ;;  %v319_v39 = vld [vmem:[%s1368_s1 + $0x20] sm:$0xff]  ;;  %v320_v40 = vld [vmem:[%s1368_s1 + $0x28] sm:$0xff]  ;;  %v321_v42 = vld [vmem:[%s1368_s1 + $0x30] sm:$0xff]  ;;  %v338_v62 = vsub.s32 %v335_v52, %v1252_v56  ;;  %v354_v3 = vadd.s32 4294967272, %v335_v52  ;;  %s931_s14 = scalar_lea.vmem %s930_s12, 4096  ;;  %p932_p8 = scmp.lt.s32.totalorder %s1319_s11, %s930_s12 }
  0x40   : > { %263 = vadd.xlane.f32.xlu0 %v262_v11  ;;  %v833_v41 = vpack.c.bf16 %v320_v40, %v319_v39  ;;  %v322_v43 = vld [vmem:[%s1368_s1 + $0x38] sm:$0xff]  ;;  %v343_v58 = vsub.s32 %v340_v54, %v1252_v56  ;;  %v361_v10 = vadd.s32 4294967264, %v335_v52  ;;  %v368_v11 = vadd.s32 4294967256, %v335_v52  ;;  %p927_p12 = pnand %p926_p6, %p1379_p11  ;;  %p933_p10 = scmp.lt.s32.totalorder %s931_s14, %s925_s28 }
  0x41   : > { %828 = vmatpush3.bf16.msra.mxu0 %v827_v34  ;;  %v836_v44 = vpack.c.bf16 %v322_v43, %v321_v42  ;;  %vm373_vm5 = vcmask 392512   ;;  %vm380_vm6 = vcmask 458112   ;;  %vm387_vm7 = vcmask 523712  }
  0x42   : > { %829 = vmatprep.subr.bf16.mxu0 %v996_v35  ;;  %v371_v32 = vsub.s32 %v368_v11, %v1252_v56  ;;  %vm438_vm8 = vcmask 1040384   ;;  %vm446_vm9 = vcmask 523264   ;;  %vm531_vm10 = vcmask 1043456   ;;  %p928_p13 = pneg %p927_p12  ;;  %p934_p0 = por %p933_p10, %p932_p8 }
  0x43   : > { %295 = vmax.xlane.f32.xlu1 %v294_v12  ;;  %vm527_vm11 = vcmask 31744  }
  0x44   : > { %292 = vmax.xlane.f32.xlu0 %v291_v13  ;;  %v350_v13 = vsub.s32 %v347_v60, %v1252_v56  ;;  %p935_p2 = pnand %p934_p0, %p928_p13 }
  0x45   : > { %831 = vmatpush3.bf16.msra.mxu0 %v830_v38 }
  0x46   : > { %832 = vmatprep.subr.bf16.mxu0 %v996_v35 }
  0x47   : > { %298 = vmax.xlane.f32.xlu1 %v297_v16 }
  0x48   : > { %272 = vadd.xlane.f32.xlu0 %v271_v17 }
  0x49   : > { %834 = vmatpush3.bf16.msra.mxu0 %v833_v41 }
  0x4a   : > { %835 = vmatprep.subr.bf16.mxu0 %v996_v35 }
  0x4b   : > { %301 = vmax.xlane.f32.xlu1 %v300_v20  ;;  %v375_v20 = vadd.s32 4294967248, %v335_v52 }
  0x4c   : > { %275 = vadd.xlane.f32.xlu0 %v274_v21 }
  0x4d   : > { %837 = vmatpush3.bf16.msra.mxu0 %v836_v44  ;;  %v378_v39 = vsub.s32 %v375_v20, %v1252_v56  ;;  %v324_v20 = vld [vmem:[%s1370_s3] sm:$0xf] }
  0x4e   : > { %822 = vmatpush3.msk.msra.mxu1 %vm531_vm10, %v324_v20 }
  0x4f   : > { %304 = vmax.xlane.f32.xlu1 %v303_v24  ;;  %v357_v24 = vsub.s32 %v354_v3, %v1252_v56 }
  0x50   : > { %278 = vadd.xlane.f32.xlu0 %v277_v25 }
  0x53   : > { %307 = vmax.xlane.f32.xlu1 %v306_v28 }
  0x54   : > { %281 = vadd.xlane.f32.xlu0 %v280_v29  ;;  %v382_v29 = vadd.s32 4294967240, %v335_v52 }
  0x56   : > { %v385_v44 = vsub.s32 %v382_v29, %v1252_v56 }
  0x57   : > { %313 = vmax.xlane.f32.xlu1 %v312_v30  ;;  %v364_v30 = vsub.s32 %v361_v10, %v1252_v56 }
  0x58   : > { %310 = vmax.xlane.f32.xlu0 %v309_v31 }
  0xc8   : > { %v267_v46 = vpop.xlane.xlu1 %266 }
  0xc9   : > { %v261_v47 = vpop.xlane.xlu0 %260  ;;  %v285_v16 = vmul.f32 0.00390625, %v267_v46 }
  0xca   : > { %v283_v63 = vmul.f32 0.00390625, %v261_v47 }
  0xcb   : > { %v351_v37 = vrot.slane %v285_v16, %v350_v13 }
  0xcc   : > { %v270_v48 = vpop.xlane.xlu1 %269  ;;  %v339_v21 = vrot.slane %v283_v63, %v338_v62 }
  0xcd   : > { %v264_v50 = vpop.xlane.xlu0 %263  ;;  %v286_v25 = vmul.f32 0.00390625, %v270_v48 }
  0xce   : > { %v284_v59 = vmul.f32 0.00390625, %v264_v50 }
  0xcf   : > { %v358_v42 = vrot.slane %v286_v25, %v357_v24 }
  0xd0   : > { %v296_v51 = vpop.xlane.xlu1 %295  ;;  %v344_v12 = vrot.slane %v284_v59, %v343_v58 }
  0xd1   : > { %v293_v53 = vpop.xlane.xlu0 %292  ;;  %v405_v34 = vrot.slane %v296_v51, %v343_v58 }
  0xd2   : > { %v346_v33 = vsel %vm345_vm1, %v344_v12, %v339_v21  ;;  %v401_v35 = vrot.slane %v293_v53, %v338_v62  ;;  %v778_v21 = vld [vmem:[%s1369_s2] ss:$0 sm:$0xff] }
  0xd3   : > { %v353_v46 = vsel %vm352_vm2, %v351_v37, %v346_v33 }
  0xd4   : > { %v299_v55 = vpop.xlane.xlu1 %298  ;;  %v406_v50 = vsel %vm345_vm1, %v405_v34, %v401_v35 }
  0xd5   : > { %v273_v57 = vpop.xlane.xlu0 %272  ;;  %v410_v38 = vrot.slane %v299_v55, %v350_v13 }
  0xd6   : > { %v287_v31 = vmul.f32 0.00390625, %v273_v57  ;;  %v360_v57 = vsel %vm359_vm3, %v358_v42, %v353_v46 }
  0xd7   : > { %v411_v53 = vsel %vm352_vm2, %v410_v38, %v406_v50 }
  0xd8   : > { %v302_v61 = vpop.xlane.xlu1 %301  ;;  %v365_v47 = vrot.slane %v287_v31, %v364_v30 }
  0xd9   : > { %v276_v7 = vpop.xlane.xlu0 %275  ;;  %v415_v43 = vrot.slane %v302_v61, %v357_v24 }
  0xda   : > { %v288_v36 = vmul.f32 0.00390625, %v276_v7  ;;  %v367_v62 = vsel %vm366_vm4, %v365_v47, %v360_v57 }
  0xdb   : > { %v416_v58 = vsel %vm359_vm3, %v415_v43, %v411_v53 }
  0xdc   : > { %v305_v17 = vpop.xlane.xlu1 %304  ;;  %v372_v51 = vrot.slane %v288_v36, %v371_v32 }
  0xdd   : > { %v279_v28 = vpop.xlane.xlu0 %278  ;;  %v420_v48 = vrot.slane %v305_v17, %v364_v30  ;;  %v780_v30 = vld [vmem:[%s1371_s4] ss:$0 sm:$0xff] }
  0xde   : > { %v289_v40 = vmul.f32 0.00390625, %v279_v28  ;;  %v374_v7 = vsel %vm373_vm5, %v372_v51, %v367_v62 }
  0xdf   : > { %v421_v63 = vsel %vm366_vm4, %v420_v48, %v416_v58 }
  0xe0   : > { %v308_v41 = vpop.xlane.xlu1 %307  ;;  %v379_v54 = vrot.slane %v289_v40, %v378_v39 }
  0xe1   : > { %v282_v45 = vpop.xlane.xlu0 %281  ;;  %v425_v52 = vrot.slane %v308_v41, %v371_v32 }
  0xe2   : > { %v290_v49 = vmul.f32 0.00390625, %v282_v45  ;;  %v381_v11 = vsel %vm380_vm6, %v379_v54, %v374_v7 }
  0xe3   : > { %v426_v10 = vsel %vm373_vm5, %v425_v52, %v421_v63 }
  0xe4   : > { %v314_v55 = vpop.xlane.xlu1 %313  ;;  %v386_v59 = vrot.slane %v290_v49, %v385_v44 }
  0xe5   : > { %v311_v60 = vpop.xlane.xlu0 %310  ;;  %v435_v61 = vrot.slane %v314_v55, %v385_v44 }
  0xe6   : > { %v430_v3 = vrot.slane %v311_v60, %v378_v39  ;;  %v388_v16 = vsel %vm387_vm7, %v386_v59, %v381_v11  ;;  %v617_v39 = vsub.s32 0, %v1252_v56 }
  0xe8   : > { %v431_v12 = vsel %vm380_vm6, %v430_v3, %v426_v10 }
  0xe9   : > { %v436_v13 = vsel %vm387_vm7, %v435_v61, %v431_v12 }
  0xea   : > { %v439_v17 = vsel %vm438_vm8, %v388_v16, %v436_v13 }
  0xeb   : > { %819 = vmatmul.mubr.msk.f32.vlgmr.msra.gmra.mrb[0].mxu0 %vm446_vm9, %v439_v17 }
 0x1be   : > { %v516_v24 = vpop.f32.mrb[0].mxu0 }
 0x1bf   : > { %v517_v25 = vadd.f32 %v778_v21, %v516_v24  ;;  %v820_v28 = vpop.f32.mrb[1].mxu0 }
 0x1c1   : > { %v520_v29 = vmax.f32 %v517_v25, 0.0 }
 0x1c3   : > { %824 = vmatmul.mubr.msk.f32.vlgmr.msra.gmra.mrb[0].mxu1 %vm527_vm11, %v520_v29 }
 0x296   : > { %v601_v31 = vpop.f32.mrb[0].mxu1 }
 0x297   : > { %v602_v32 = vadd.f32 %v780_v30, %v601_v31  ;;  %v825_v33 = vpop.f32.mrb[1].mxu1 }
 0x299   : > { %v606_v34 = vrot.slane %v602_v32, 1 }
 0x29b   : > { %v608_v35 = vadd.f32 %v606_v34, %v602_v32 }
 0x29d   : > { %v783_v36 = vmul.f32 -1.442695, %v608_v35 }
 0x29f   : > { %891 = vpow2.f32 %v783_v36 }
 0x2a9   : > { %v892_v37 = vpop.eup %891 }
 0x2aa   : > { %v612_v38 = vadd.f32 1.0, %v892_v37 }
 0x2ac   : > { %893 = vrcp.f32 %v612_v38 }
 0x2b6   : > { %v894_v40 = vpop.eup %893 }
 0x2b7   : > { %v618_v41 = vrot.slane %v894_v40, %v617_v39 }
 0x2b9   : > { %624 = vbcast.lane.b32.xlu1 %v618_v41, 264  ;;  %620 = vbcast.lane.b32.xlu0 %v618_v41, 256 }
 0x2bd   : > { %628 = vbcast.lane.b32.xlu1 %v618_v41, 272  ;;  %636 = vbcast.lane.b32.xlu0 %v618_v41, 288 }
 0x2c1   : > { %632 = vbcast.lane.b32.xlu1 %v618_v41, 280  ;;  %644 = vbcast.lane.b32.xlu0 %v618_v41, 304 }
 0x2c5   : > { %640 = vbcast.lane.b32.xlu1 %v618_v41, 296 }
 0x2c9   : > { %648 = vbcast.lane.b32.xlu1 %v618_v41, 312 }
 0x32b   : > { %v625_v42 = vpop.permute.xlu1 %624  ;;  %v621_v43 = vpop.permute.xlu0 %620 }
 0x32c   : > { %v652_v44 = vmul.f32 %v625_v42, %v1171_v8  ;;  %v653_v45 = vmul.f32 %v625_v42, %v1174_v9  ;;  %v650_v46 = vmul.f32 %v621_v43, %v1155_v2  ;;  %v651_v56 = vmul.f32 %v621_v43, %v1160_v4 }
 0x32e   : > { %668 = vst [vmem:[%s1286_s10 + $0x10] sm:$0xff] %v652_v44  ;;  %669 = vst [vmem:[%s1286_s10 + $0x18] sm:$0xff] %v653_v45 }
 0x32f   : > { %666 = vst [vmem:[%s1286_s10] sm:$0xff] %v650_v46  ;;  %667 = vst [vmem:[%s1286_s10 + $0x8] sm:$0xff] %v651_v56  ;;  %v629_v8 = vpop.permute.xlu1 %628  ;;  %v637_v2 = vpop.permute.xlu0 %636 }
 0x330   : > { %v654_v4 = vmul.f32 %v629_v8, %v1149_v0  ;;  %v655_v9 = vmul.f32 %v629_v8, %v1152_v1  ;;  %v658_v47 = vmul.f32 %v637_v2, %v1185_v14  ;;  %v659_v48 = vmul.f32 %v637_v2, %v1188_v15 }
 0x332   : > { %670 = vst [vmem:[%s1286_s10 + $0x20] sm:$0xff] %v654_v4  ;;  %671 = vst [vmem:[%s1286_s10 + $0x28] sm:$0xff] %v655_v9 }
 0x333   : > { %674 = vst [vmem:[%s1286_s10 + $0x40] sm:$0xff] %v658_v47  ;;  %675 = vst [vmem:[%s1286_s10 + $0x48] sm:$0xff] %v659_v48  ;;  %v633_v49 = vpop.permute.xlu1 %632  ;;  %v645_v50 = vpop.permute.xlu0 %644 }
 0x334   : > { %v656_v0 = vmul.f32 %v633_v49, %v1163_v5  ;;  %v657_v51 = vmul.f32 %v633_v49, %v1166_v6  ;;  %v662_v1 = vmul.f32 %v645_v50, %v1205_v22  ;;  %v663_v14 = vmul.f32 %v645_v50, %v1208_v23 }
 0x336   : > { %672 = vst [vmem:[%s1286_s10 + $0x30] sm:$0xff] %v656_v0  ;;  %673 = vst [vmem:[%s1286_s10 + $0x38] sm:$0xff] %v657_v51 }
 0x337   : > { %678 = vst [vmem:[%s1286_s10 + $0x60] sm:$0xff] %v662_v1  ;;  %679 = vst [vmem:[%s1286_s10 + $0x68] sm:$0xff] %v663_v14  ;;  %v641_v15 = vpop.permute.xlu1 %640 }
 0x338   : > { %v660_v52 = vmul.f32 %v641_v15, %v1195_v18  ;;  %v661_v53 = vmul.f32 %v641_v15, %v1198_v19 }
 0x33a   : > { %676 = vst [vmem:[%s1286_s10 + $0x50] sm:$0xff] %v660_v52  ;;  %677 = vst [vmem:[%s1286_s10 + $0x58] sm:$0xff] %v661_v53 }
 0x33b   : > { %v649_v5 = vpop.permute.xlu1 %648 }
 0x33c   : > { %v664_v6 = vmul.f32 %v649_v5, %v1215_v26  ;;  %v665_v18 = vmul.f32 %v649_v5, %v1218_v27 }
 0x33e   : > { %680 = vst [vmem:[%s1286_s10 + $0x70] sm:$0xff] %v664_v6  ;;  %681 = vst [vmem:[%s1286_s10 + $0x78] sm:$0xff] %v665_v18 }
 0x33f   : > { %938 = shalt.err (!%p935_p2)
}
 0x340   : > { %s939_s15 = scalar_lea.hbm %s1317_s26, 2048  ;;  %s943_s7 = scalar_lea.hbm %s1372_s5, 4096 }
 0x341   : > { %p940_p4 = scmp.ne.s32.totalorder %s1317_s26, %s939_s15  ;;  %p944_p9 = scmp.lt.u32.totalorder %s1317_s26, %s1372_s5 }
 0x342   : > { %p945_p1 = scmp.lt.u32.totalorder %s943_s7, %s939_s15  ;;  %p947_p6 = scmp.lt.u32.totalorder %s939_s15, %s1317_s26 }
 0x343   : > { %p941_p5 = pnand %p940_p4, %p1379_p11 }
 0x344   : > { %p946_p3 = por %p945_p1, %p944_p9 }
 0x345   : > { %p942_p7 = pneg %p941_p5 }
 0x346   : > { %p948_p12 = por %p947_p6, %p946_p3 }
 0x348   : > { %p949_p13 = pnand %p948_p12, %p942_p7 }
 0x34a   : > { %952 = shalt.err (!%p949_p13)
}
 0x34b   : > { %s1000_s25 = smov 256   ;;  %s1001_s13 = smov 16  }
 0x34c   : > { %840 = dma.vmem_to_hbm [thread:$0]  (%p1379_p11), %s1319_s11, 2048, %s1317_s26, %s683_s22, %s1000_s25, %s1000_s25, %s1001_s13  }
 0x34d PF: > { %s711_s17 = sand.u32 1, %s979_s18   ;;  %p1380_p8 = scmp.ne.s32.totalorder %s1377_s6, 0 }
 0x34e   : > { %p1381_p10 = scmp.ge.s32.totalorder %s991_s21, 2  ;;  %s712_s28 = scalar_lea.sflag [#allocation4], %s711_s17 }
 0x350   : > { %p847_p0 = pnand %p1381_p10, %p1380_p8 }
 0x352   : > { %974 = dma.done.wait (!%p847_p0), %s712_s28, 2048  }
 0x353   : > { %976 = vsyncadd (!%p847_p0), %s712_s28, 4294965248  ;;  %p18_p2 = scmp.ge.s32.totalorder %s1057_s24, 4   ;;  %s1382_s18 = smov %s983_s19 }
 0x354   : > { %s1383_s19 = smov %s987_s20  ;;  %s1384_s20 = smov %s1069_s27 }
 0x355   : > { %s1385_s21 = smov %s1057_s24  ;;  %20 = sbr.rel (!%p18_p2) target bundleno = 5 (0x5), region = 85 }
 0x35c   :  { %717 = vsyncpa [#allocation3], 1 }
 0x35d   :  { %719 = vsyncpa [#allocation3 + $0x1], 1 }
 0x35e   :  { %720 = vsyncpa [#allocation4], 1 }
 0x35f   :  { %722 = vsyncpa [#allocation4 + $0x1], 1 }

</bundles_post_ra>
